<compile_context>
chip_gen: v7x
topology: tpu7x:2x2x1
jax: 0.10.0
libtpu: 0.0.40
codegen_flags: <defaults>
</compile_context>

<pallas_src>
import jax
import jax.numpy as jnp
from jax.experimental import pallas as pl
from jax.experimental.pallas import tpu as pltpu

LANE = 128       # lane-aligned padding for hidden feature dims
OUT_PAD = 8      # padded output feature dim (3 -> 8); block last-dim == array dim
MAX_TB = 1024    # max batch rows per grid step (multiple of 8)

IN_DIM = 64
H1_DIM = 40
H2_DIM = 20
OUT_DIM = 3


def _round_up(x, m):
    return (x + m - 1) // m * m


def mlp_kernel(x_ref, w1_ref, b1_ref, w2_ref, b2_ref, w3_ref, b3_ref, o_ref):
    # One (tb, 64) row-tile of x; all (padded) weights resident in VMEM.
    # Dots accumulate in f32; bias-add / ReLU stay in f32 (v5e has no bf16 VPU).
    wdt = w1_ref.dtype
    x = x_ref[...]
    h1 = jnp.dot(x, w1_ref[...], preferred_element_type=jnp.float32) + b1_ref[...]
    h1 = jnp.maximum(h1, 0.0)
    h2 = jnp.dot(h1.astype(wdt), w2_ref[...],
                 preferred_element_type=jnp.float32) + b2_ref[...]
    h2 = jnp.maximum(h2, 0.0)
    h3 = jnp.dot(h2.astype(wdt), w3_ref[...],
                 preferred_element_type=jnp.float32) + b3_ref[...]
    o_ref[...] = h3.astype(o_ref.dtype)   # (tb, 8) store


def mlp_forward(x, padded_params, max_tb=MAX_TB):
    """x: [B, 64].  padded_params: lane-padded weights/biases.  Returns [B, 3] f32."""
    w1, b1, w2, b2, w3, b3 = padded_params
    B, in_dim = x.shape
    out_pad = w3.shape[1]

    # Match activation dtype to the (possibly bf16) weights: halves input DMA.
    if x.dtype != w1.dtype:
        x = x.astype(w1.dtype)

    # Batch tiling: single block for small batches, >=2 blocks for large ones
    # (the "parallel" axis then shards across v7x's two TensorCores).
    Bp = _round_up(B, 8)
    tb = min(Bp, max_tb)
    n_blocks = pl.cdiv(Bp, tb)
    Bp = n_blocks * tb
    if Bp != B:
        # Only the ragged tail is padded; skipped entirely when tb divides B.
        x = jnp.pad(x, ((0, Bp - B), (0, 0)))

    full2d = lambda shape: pl.BlockSpec(shape, lambda i: (0, 0))

    xbytes = x.dtype.itemsize
    param_bytes = sum(int(p.size) * p.dtype.itemsize for p in padded_params)
    flops = 2 * Bp * (in_dim * w1.shape[1] + w2.shape[0] * w2.shape[1]
                      + w3.shape[0] * out_pad)
    bytes_accessed = Bp * (in_dim * xbytes + out_pad * 4) + param_bytes

    out_padded = pl.pallas_call(
        mlp_kernel,
        out_shape=jax.ShapeDtypeStruct((Bp, out_pad), jnp.float32),
        grid=(n_blocks,),
        in_specs=[
            pl.BlockSpec((tb, in_dim), lambda i: (i, 0)),   # x: blocked on rows
            full2d(w1.shape), full2d(b1.shape),             # weights: VMEM-resident
            full2d(w2.shape), full2d(b2.shape),
            full2d(w3.shape), full2d(b3.shape),
        ],
        out_specs=pl.BlockSpec((tb, out_pad), lambda i: (i, 0)),
        compiler_params=pltpu.CompilerParams(
            dimension_semantics=("parallel",)),
        cost_estimate=pl.CostEstimate(
            flops=flops, transcendentals=0, bytes_accessed=bytes_accessed),
    )(x, w1, b1, w2, b2, w3, b3)

    return out_padded[:B, :OUT_DIM]


def init_params(key):
    """Deterministic init mimicking nn.Linear default U(-1/sqrt(fan_in), ...).

    Returns true-sized params stored [in, out] (transposed vs. PyTorch [out, in])."""
    dims = [(IN_DIM, H1_DIM), (H1_DIM, H2_DIM), (H2_DIM, OUT_DIM)]
    params = []
    for fan_in, fan_out in dims:
        kw, kb, key = jax.random.split(key, 3)
        bound = 1.0 / jnp.sqrt(fan_in)
        w = jax.random.uniform(kw, (fan_in, fan_out), jnp.float32, -bound, bound)
        b = jax.random.uniform(kb, (1, fan_out), jnp.float32, -bound, bound)
        params.extend([w, b])
    return tuple(params)


def pad_params(params, weights_dtype=jnp.float32):
    """Zero-pad hidden dims to 128 lanes and the output dim to 8 lanes.

    Padding is exact (zero rows/cols contribute nothing, ReLU(0)=0).  Weights
    may optionally be stored bf16 (v6e/v7x); biases stay f32 so the bias-add
    happens on the f32 accumulator."""
    w1, b1, w2, b2, w3, b3 = params

    def pad_to(a, shape, dt=None):
        out = jnp.pad(a, [(0, t - s) for s, t in zip(a.shape, shape)])
        return out.astype(dt) if dt is not None else out

    return (
        pad_to(w1, (IN_DIM, LANE), weights_dtype), pad_to(b1, (1, LANE)),
        pad_to(w2, (LANE, LANE), weights_dtype),   pad_to(b2, (1, LANE)),
        pad_to(w3, (LANE, OUT_PAD), weights_dtype), pad_to(b3, (1, OUT_PAD)),
    )


def reference_forward(x, params):
    w1, b1, w2, b2, w3, b3 = params
    h1 = jnp.maximum(x @ w1 + b1, 0.0)
    h2 = jnp.maximum(h1 @ w2 + b2, 0.0)
    return h2 @ w3 + b3


if __name__ == "__main__":
    key = jax.random.PRNGKey(0)
    kx, kx2, kp = jax.random.split(key, 3)

    params = init_params(kp)

    # --- f32 path, small batch (single block, no grid overhead, exact) ---
    B = 256
    x = jax.random.normal(kx, (B, IN_DIM), jnp.float32)
    padded_f32 = pad_params(params, jnp.float32)
    out = jax.block_until_ready(mlp_forward(x, padded_f32))
    ref = reference_forward(x, params)
    assert out.shape == (B, OUT_DIM), out.shape
    assert jnp.allclose(out, ref, atol=1e-4, rtol=1e-4), "f32 mismatch vs reference"

    # --- f32 path, larger batch (exercises the 2-block parallel grid) ---
    B2 = 2048
    x2 = jax.random.normal(kx2, (B2, IN_DIM), jnp.float32)
    out2 = jax.block_until_ready(mlp_forward(x2, padded_f32))
    ref2 = reference_forward(x2, params)
    assert out2.shape == (B2, OUT_DIM), out2.shape
    assert jnp.allclose(out2, ref2, atol=1e-4, rtol=1e-4), "f32 grid mismatch"

    # --- bf16 weights/activations path (v6e/v7x memory-roofline option) ---
    padded_bf16 = pad_params(params, jnp.bfloat16)
    out_bf16 = jax.block_until_ready(mlp_forward(x, padded_bf16))
    assert out_bf16.shape == (B, OUT_DIM), out_bf16.shape
    assert jnp.allclose(out_bf16, ref, atol=5e-2, rtol=5e-2), "bf16 mismatch"

    print("KERNEL_OK")
</pallas_src>

<mosaic_0001>
module attributes {stable_mosaic.version = 11 : i64} {
  func.func @mlp_kernel(%arg0: i32, %arg1: memref<256x64xf32, #tpu.memory_space<vmem>>, %arg2: memref<64x128xf32, #tpu.memory_space<vmem>>, %arg3: memref<1x128xf32, #tpu.memory_space<vmem>>, %arg4: memref<128x128xf32, #tpu.memory_space<vmem>>, %arg5: memref<1x128xf32, #tpu.memory_space<vmem>>, %arg6: memref<128x8xf32, #tpu.memory_space<vmem>>, %arg7: memref<1x8xf32, #tpu.memory_space<vmem>>, %arg8: memref<256x8xf32, #tpu.memory_space<vmem>>) attributes {dimension_semantics = [#tpu.dimension_semantics<parallel>], iteration_bounds = array<i64: 1>, scalar_prefetch = 0 : i64, scratch_operands = 0 : i64, tpu.core_type = #tpu.core_type<tc>, window_params = [{transform_indices = @transform_0, window_bounds = array<i64: 256, 64>}, {pipeline_mode = #tpu.pipeline_mode<synchronous>, transform_indices = @transform_1, window_bounds = array<i64: 64, 128>}, {pipeline_mode = #tpu.pipeline_mode<synchronous>, transform_indices = @transform_2, window_bounds = array<i64: 1, 128>}, {pipeline_mode = #tpu.pipeline_mode<synchronous>, transform_indices = @transform_3, window_bounds = array<i64: 128, 128>}, {pipeline_mode = #tpu.pipeline_mode<synchronous>, transform_indices = @transform_4, window_bounds = array<i64: 1, 128>}, {pipeline_mode = #tpu.pipeline_mode<synchronous>, transform_indices = @transform_5, window_bounds = array<i64: 128, 8>}, {pipeline_mode = #tpu.pipeline_mode<synchronous>, transform_indices = @transform_6, window_bounds = array<i64: 1, 8>}, {transform_indices = @transform_7, window_bounds = array<i64: 256, 8>}]} {
    %c0 = arith.constant 0 : index
    %c0_0 = arith.constant 0 : index
    %0 = vector.load %arg1[%c0, %c0_0] : memref<256x64xf32, #tpu.memory_space<vmem>>, vector<256x64xf32>
    %c0_1 = arith.constant 0 : index
    %c0_2 = arith.constant 0 : index
    %1 = vector.load %arg2[%c0_1, %c0_2] : memref<64x128xf32, #tpu.memory_space<vmem>>, vector<64x128xf32>
    %cst = arith.constant dense<0.000000e+00> : vector<256x128xf32>
    %2 = tpu.matmul %0, %1, %cst {dimension_numbers = #tpu.dot_dimension_numbers<[1], [0], [0], [1], [0, 0, 1, 1], [], []>} : vector<256x64xf32>, vector<64x128xf32>, vector<256x128xf32> -> vector<256x128xf32>
    %c0_3 = arith.constant 0 : index
    %c0_4 = arith.constant 0 : index
    %3 = vector.load %arg3[%c0_3, %c0_4] : memref<1x128xf32, #tpu.memory_space<vmem>>, vector<1x128xf32>
    %4 = vector.broadcast %3 : vector<1x128xf32> to vector<256x128xf32>
    %5 = arith.addf %2, %4 : vector<256x128xf32>
    %cst_5 = arith.constant 0.000000e+00 : f32
    %6 = vector.broadcast %cst_5 : f32 to vector<256x128xf32>
    %7 = arith.maximumf %5, %6 : vector<256x128xf32>
    %c0_6 = arith.constant 0 : index
    %c0_7 = arith.constant 0 : index
    %8 = vector.load %arg4[%c0_6, %c0_7] : memref<128x128xf32, #tpu.memory_space<vmem>>, vector<128x128xf32>
    %cst_8 = arith.constant dense<0.000000e+00> : vector<256x128xf32>
    %9 = tpu.matmul %7, %8, %cst_8 {dimension_numbers = #tpu.dot_dimension_numbers<[1], [0], [0], [1], [0, 0, 1, 1], [], []>} : vector<256x128xf32>, vector<128x128xf32>, vector<256x128xf32> -> vector<256x128xf32>
    %c0_9 = arith.constant 0 : index
    %c0_10 = arith.constant 0 : index
    %10 = vector.load %arg5[%c0_9, %c0_10] : memref<1x128xf32, #tpu.memory_space<vmem>>, vector<1x128xf32>
    %11 = vector.broadcast %10 : vector<1x128xf32> to vector<256x128xf32>
    %12 = arith.addf %9, %11 : vector<256x128xf32>
    %cst_11 = arith.constant 0.000000e+00 : f32
    %13 = vector.broadcast %cst_11 : f32 to vector<256x128xf32>
    %14 = arith.maximumf %12, %13 : vector<256x128xf32>
    %c0_12 = arith.constant 0 : index
    %c0_13 = arith.constant 0 : index
    %15 = vector.load %arg6[%c0_12, %c0_13] : memref<128x8xf32, #tpu.memory_space<vmem>>, vector<128x8xf32>
    %cst_14 = arith.constant dense<0.000000e+00> : vector<256x8xf32>
    %16 = tpu.matmul %14, %15, %cst_14 {dimension_numbers = #tpu.dot_dimension_numbers<[1], [0], [0], [1], [0, 0, 1, 1], [], []>} : vector<256x128xf32>, vector<128x8xf32>, vector<256x8xf32> -> vector<256x8xf32>
    %c0_15 = arith.constant 0 : index
    %c0_16 = arith.constant 0 : index
    %17 = vector.load %arg7[%c0_15, %c0_16] : memref<1x8xf32, #tpu.memory_space<vmem>>, vector<1x8xf32>
    %18 = vector.broadcast %17 : vector<1x8xf32> to vector<256x8xf32>
    %19 = arith.addf %16, %18 : vector<256x8xf32>
    %c0_17 = arith.constant 0 : index
    %c0_18 = arith.constant 0 : index
    %20 = vector.load %arg8[%c0_17, %c0_18] : memref<256x8xf32, #tpu.memory_space<vmem>>, vector<256x8xf32>
    tpu.vector_store %arg8[%c0_17, %c0_18], %19 {strides = array<i32>} : memref<256x8xf32, #tpu.memory_space<vmem>>, vector<256x8xf32>,
    return
  }
  func.func @transform_0(%arg0: i32) -> (i32, i32) {
    %c0_i32 = arith.constant 0 : i32
    %c0_i32_0 = arith.constant 0 : i32
    return %arg0, %c0_i32 : i32, i32
  }
  func.func @transform_1(%arg0: i32) -> (i32, i32) {
    %c0_i32 = arith.constant 0 : i32
    %c0_i32_0 = arith.constant 0 : i32
    %c0_i32_1 = arith.constant 0 : i32
    return %c0_i32, %c0_i32_0 : i32, i32
  }
  func.func @transform_2(%arg0: i32) -> (i32, i32) {
    %c0_i32 = arith.constant 0 : i32
    %c0_i32_0 = arith.constant 0 : i32
    %c0_i32_1 = arith.constant 0 : i32
    return %c0_i32, %c0_i32_0 : i32, i32
  }
  func.func @transform_3(%arg0: i32) -> (i32, i32) {
    %c0_i32 = arith.constant 0 : i32
    %c0_i32_0 = arith.constant 0 : i32
    %c0_i32_1 = arith.constant 0 : i32
    return %c0_i32, %c0_i32_0 : i32, i32
  }
  func.func @transform_4(%arg0: i32) -> (i32, i32) {
    %c0_i32 = arith.constant 0 : i32
    %c0_i32_0 = arith.constant 0 : i32
    %c0_i32_1 = arith.constant 0 : i32
    return %c0_i32, %c0_i32_0 : i32, i32
  }
  func.func @transform_5(%arg0: i32) -> (i32, i32) {
    %c0_i32 = arith.constant 0 : i32
    %c0_i32_0 = arith.constant 0 : i32
    %c0_i32_1 = arith.constant 0 : i32
    return %c0_i32, %c0_i32_0 : i32, i32
  }
  func.func @transform_6(%arg0: i32) -> (i32, i32) {
    %c0_i32 = arith.constant 0 : i32
    %c0_i32_0 = arith.constant 0 : i32
    %c0_i32_1 = arith.constant 0 : i32
    return %c0_i32, %c0_i32_0 : i32, i32
  }
  func.func @transform_7(%arg0: i32) -> (i32, i32) {
    %c0_i32 = arith.constant 0 : i32
    %c0_i32_0 = arith.constant 0 : i32
    return %arg0, %c0_i32 : i32, i32
  }
}

</mosaic_0001>

<bundles_post_ra>
// kernel: tpu_custom_call.1
= control target key start
LH: loop header
LB: loop body
LE: loop exit
PB: predicated region body
PF: predicated region fallthrough
CT: control target
= control target key end

     0   :  { %vm73_vm0 = vcmask 523264   ;;  %vm955_vm1 = vcmask 64512   ;;  %s2023_s1 = inlined_call_operand.vmem [shape: f32[64,128], index: 1, kind: input, shape index: {}]   ;;  %s2024_s0 = inlined_call_operand.vmem [shape: f32[256,64], index: 0, kind: input, shape index: {}]   ;;  %s2025_s3 = inlined_call_operand.vmem [shape: f32[128,128], index: 3, kind: input, shape index: {}]   ;;  %s2026_s5 = inlined_call_operand.vmem [shape: f32[128,8], index: 5, kind: input, shape index: {}]   ;;  %s2027_s2 = inlined_call_operand.vmem [shape: f32[1,128], index: 2, kind: input, shape index: {}]   ;;  %s2028_s4 = inlined_call_operand.vmem [shape: f32[1,128], index: 4, kind: input, shape index: {}]   ;;  %s2029_s6 = inlined_call_operand.vmem [shape: f32[1,8], index: 6, kind: input, shape index: {}]   ;;  %s2030_s7 = inlined_call_operand.vmem [shape: f32[256,8], index: 7, kind: output, shape index: {}]  }
   0x1   :  { %v58_v0 = vld [vmem:[%s2023_s1] sm:$0xff]  ;;  %v59_v1 = vld [vmem:[%s2023_s1 + $0x8] sm:$0xff]  ;;  %v60_v2 = vld [vmem:[%s2023_s1 + $0x10] sm:$0xff] }
   0x2   :  { %v1387_v3 = vpack.c.bf16 %v59_v1, %v58_v0  ;;  %v61_v4 = vld [vmem:[%s2023_s1 + $0x18] sm:$0xff]  ;;  %v62_v6 = vld [vmem:[%s2023_s1 + $0x20] sm:$0xff]  ;;  %v63_v7 = vld [vmem:[%s2023_s1 + $0x28] sm:$0xff] }
   0x3   :  { %v1391_v5 = vpack.c.bf16 %v61_v4, %v60_v2  ;;  %v26_v8 = vld [vmem:[%s2024_s0] sm:$0xff]  ;;  %v1395_v9 = vpack.c.bf16 %v63_v7, %v62_v6  ;;  %v64_v10 = vld [vmem:[%s2023_s1 + $0x30] sm:$0xff]  ;;  %v65_v11 = vld [vmem:[%s2023_s1 + $0x38] sm:$0xff] }
   0x4   :  { %1388 = vmatprep.subr.bf16.mxu0 %v1387_v3  ;;  %1179 = vmatprep.mubr.msk.f32.mxu0 %vm73_vm0, %v26_v8  ;;  %v42_v12 = vld [vmem:[%s2024_s0 + $0x80] sm:$0xff]  ;;  %v1399_v13 = vpack.c.bf16 %v65_v11, %v64_v10  ;;  %v428_v15 = vld [vmem:[%s2025_s3 + $0x8] sm:$0xff]  ;;  %v429_v17 = vld [vmem:[%s2025_s3 + $0x10] sm:$0xff] }
   0x5   :  { %1390 = vmatpush3.bf16.msra.mxu0 %v1387_v3  ;;  %1467 = vmatprep.subr.bf16.mxu1 %v1387_v3  ;;  %v427_v14 = vld [vmem:[%s2025_s3] sm:$0xff]  ;;  %v430_v18 = vld [vmem:[%s2025_s3 + $0x18] sm:$0xff]  ;;  %v27_v19 = vld [vmem:[%s2024_s0 + $0x8] sm:$0xff] }
   0x6   :  { %1392 = vmatprep.subr.bf16.mxu0 %v1391_v5  ;;  %1471 = vmatpush3.bf16.msra.mxu1 %v1387_v3  ;;  %v1403_v16 = vpack.c.bf16 %v428_v15, %v427_v14  ;;  %v28_v20 = vld [vmem:[%s2024_s0 + $0x10] sm:$0xff]  ;;  %v43_v21 = vld [vmem:[%s2024_s0 + $0x88] sm:$0xff]  ;;  %v1407_v23 = vpack.c.bf16 %v430_v18, %v429_v17  ;;  %v431_v24 = vld [vmem:[%s2025_s3 + $0x20] sm:$0xff] }
   0x7   :  { %1468 = vmatprep.subr.bf16.mxu1 %v1391_v5  ;;  %1203 = vmatprep.mubr.msk.f32.mxu1 %vm73_vm0, %v42_v12  ;;  %v44_v22 = vld [vmem:[%s2024_s0 + $0x90] sm:$0xff]  ;;  %v432_v25 = vld [vmem:[%s2025_s3 + $0x28] sm:$0xff]  ;;  %v29_v26 = vld [vmem:[%s2024_s0 + $0x18] sm:$0xff] }
   0x8   :  { %v30_v27 = vld [vmem:[%s2024_s0 + $0x20] sm:$0xff]  ;;  %v45_v28 = vld [vmem:[%s2024_s0 + $0x98] sm:$0xff]  ;;  %v1411_v30 = vpack.c.bf16 %v432_v25, %v431_v24  ;;  %v433_v31 = vld [vmem:[%s2025_s3 + $0x30] sm:$0xff] }
   0x9   :  { %1394 = vmatpush3.bf16.msra.mxu0 %v1391_v5  ;;  %v46_v29 = vld [vmem:[%s2024_s0 + $0xa0] sm:$0xff]  ;;  %v434_v32 = vld [vmem:[%s2025_s3 + $0x38] sm:$0xff]  ;;  %v31_v33 = vld [vmem:[%s2024_s0 + $0x28] sm:$0xff] }
   0xa   :  { %1396 = vmatprep.subr.bf16.mxu0 %v1395_v9  ;;  %1472 = vmatpush3.bf16.msra.mxu1 %v1391_v5  ;;  %v32_v34 = vld [vmem:[%s2024_s0 + $0x30] sm:$0xff]  ;;  %v47_v35 = vld [vmem:[%s2024_s0 + $0xa8] sm:$0xff]  ;;  %v1415_v37 = vpack.c.bf16 %v434_v32, %v433_v31  ;;  %v435_v38 = vld [vmem:[%s2025_s3 + $0x40] sm:$0xff] }
   0xb   :  { %1469 = vmatprep.subr.bf16.mxu1 %v1395_v9  ;;  %v48_v36 = vld [vmem:[%s2024_s0 + $0xb0] sm:$0xff]  ;;  %v436_v39 = vld [vmem:[%s2025_s3 + $0x48] sm:$0xff]  ;;  %v33_v40 = vld [vmem:[%s2024_s0 + $0x38] sm:$0xff] }
   0xc   :  { %v34_v41 = vld [vmem:[%s2024_s0 + $0x40] sm:$0xff]  ;;  %v49_v42 = vld [vmem:[%s2024_s0 + $0xb8] sm:$0xff]  ;;  %v1419_v44 = vpack.c.bf16 %v436_v39, %v435_v38  ;;  %v437_v45 = vld [vmem:[%s2025_s3 + $0x50] sm:$0xff] }
   0xd   :  { %1398 = vmatpush3.bf16.msra.mxu0 %v1395_v9  ;;  %v50_v43 = vld [vmem:[%s2024_s0 + $0xc0] sm:$0xff]  ;;  %v438_v46 = vld [vmem:[%s2025_s3 + $0x58] sm:$0xff]  ;;  %v35_v47 = vld [vmem:[%s2024_s0 + $0x48] sm:$0xff] }
   0xe   :  { %1400 = vmatprep.subr.bf16.mxu0 %v1399_v13  ;;  %1473 = vmatpush3.bf16.msra.mxu1 %v1395_v9  ;;  %v36_v48 = vld [vmem:[%s2024_s0 + $0x50] sm:$0xff]  ;;  %v51_v49 = vld [vmem:[%s2024_s0 + $0xc8] sm:$0xff]  ;;  %v1423_v51 = vpack.c.bf16 %v438_v46, %v437_v45  ;;  %v439_v52 = vld [vmem:[%s2025_s3 + $0x60] sm:$0xff] }
   0xf   :  { %1470 = vmatprep.subr.bf16.mxu1 %v1399_v13  ;;  %v52_v50 = vld [vmem:[%s2024_s0 + $0xd0] sm:$0xff]  ;;  %v440_v53 = vld [vmem:[%s2025_s3 + $0x68] sm:$0xff]  ;;  %v37_v54 = vld [vmem:[%s2024_s0 + $0x58] sm:$0xff] }
  0x10   :  { %v38_v55 = vld [vmem:[%s2024_s0 + $0x60] sm:$0xff]  ;;  %v53_v56 = vld [vmem:[%s2024_s0 + $0xd8] sm:$0xff]  ;;  %v1427_v58 = vpack.c.bf16 %v440_v53, %v439_v52  ;;  %v39_v59 = vld [vmem:[%s2024_s0 + $0x68] sm:$0xff] }
  0x11   :  { %1402 = vmatpush3.bf16.msra.mxu0 %v1399_v13  ;;  %v54_v57 = vld [vmem:[%s2024_s0 + $0xe0] sm:$0xff]  ;;  %v40_v60 = vld [vmem:[%s2024_s0 + $0x70] sm:$0xff]  ;;  %v55_v61 = vld [vmem:[%s2024_s0 + $0xe8] sm:$0xff] }
  0x12   :  { %1474 = vmatpush3.bf16.msra.mxu1 %v1399_v13  ;;  %v56_v62 = vld [vmem:[%s2024_s0 + $0xf0] sm:$0xff]  ;;  %v41_v63 = vld [vmem:[%s2024_s0 + $0x78] sm:$0xff]  ;;  %v707_v4 = vld [vmem:[%s2026_s5] sm:$0xff] }
  0x13   :  { %1404 = vmatprep.subr.bf16.mxu1 %v1403_v16  ;;  %v57_v0 = vld [vmem:[%s2024_s0 + $0xf8] sm:$0xff]  ;;  %v441_v1 = vld [vmem:[%s2025_s3 + $0x70] sm:$0xff]  ;;  %v708_v5 = vld [vmem:[%s2026_s5 + $0x8] sm:$0xff] }
  0x14   :  { %1180 = vmatmul.mubr.msk.f32.vlgmr.msra.gmra.mrb[0].mxu0 %vm73_vm0, %v27_v19  ;;  %v442_v2 = vld [vmem:[%s2025_s3 + $0x78] sm:$0xff]  ;;  %v709_v6 = vld [vmem:[%s2026_s5 + $0x10] sm:$0xff]  ;;  %v1435_v7 = vpack.c.bf16 %v708_v5, %v707_v4  ;;  %v711_v10 = vld [vmem:[%s2026_s5 + $0x20] sm:$0xff] }
  0x15   :  { %1182 = vmatprep.mubr.msk.f32.mxu0 %vm73_vm0, %v28_v20  ;;  %1204 = vmatmul.mubr.msk.f32.vlgmr.msra.gmra.mrb[0].mxu1 %vm73_vm0, %v43_v21  ;;  %v1431_v3 = vpack.c.bf16 %v442_v2, %v441_v1  ;;  %v710_v8 = vld [vmem:[%s2026_s5 + $0x18] sm:$0xff]  ;;  %v712_v11 = vld [vmem:[%s2026_s5 + $0x28] sm:$0xff]  ;;  %v713_v13 = vld [vmem:[%s2026_s5 + $0x30] sm:$0xff] }
  0x16   :  { %1206 = vmatprep.mubr.msk.f32.mxu1 %vm73_vm0, %v44_v22  ;;  %1406 = vmatpush3.bf16.msra.mxu1 %v1403_v16  ;;  %v1439_v9 = vpack.c.bf16 %v710_v8, %v709_v6  ;;  %v1443_v12 = vpack.c.bf16 %v712_v11, %v711_v10  ;;  %v714_v14 = vld [vmem:[%s2026_s5 + $0x38] sm:$0xff]  ;;  %v715_v16 = vld [vmem:[%s2026_s5 + $0x40] sm:$0xff]  ;;  %v716_v17 = vld [vmem:[%s2026_s5 + $0x48] sm:$0xff] }
  0x17   :  { %1408 = vmatprep.subr.bf16.mxu1 %v1407_v23  ;;  %1436 = vmatprep.subr.bf16.mxu0 %v1435_v7  ;;  %v1447_v15 = vpack.c.bf16 %v714_v14, %v713_v13  ;;  %v1451_v18 = vpack.c.bf16 %v716_v17, %v715_v16  ;;  %v717_v19 = vld [vmem:[%s2026_s5 + $0x50] sm:$0xff]  ;;  %v718_v20 = vld [vmem:[%s2026_s5 + $0x58] sm:$0xff]  ;;  %v719_v22 = vld [vmem:[%s2026_s5 + $0x60] sm:$0xff] }
  0x18   :  { %1183 = vmatmul.mubr.msk.f32.gmra.mrb[2].mxu0 %vm73_vm0, %v29_v26  ;;  %v1455_v21 = vpack.c.bf16 %v718_v20, %v717_v19  ;;  %v1760_v25 = vld [vmem:[%s2027_s2] ss:$0 sm:$0xff] }
  0x19   :  { %1185 = vmatprep.mubr.msk.f32.mxu0 %vm73_vm0, %v30_v27  ;;  %1207 = vmatmul.mubr.msk.f32.gmra.mrb[2].mxu1 %vm73_vm0, %v45_v28 }
  0x1a   :  { %1209 = vmatprep.mubr.msk.f32.mxu1 %vm73_vm0, %v46_v29  ;;  %1410 = vmatpush3.bf16.msra.mxu1 %v1407_v23  ;;  %v720_v23 = vld [vmem:[%s2026_s5 + $0x68] sm:$0xff] }
  0x1b   :  { %1412 = vmatprep.subr.bf16.mxu1 %v1411_v30  ;;  %1438 = vmatpush3.bf16.msra.mxu0 %v1435_v7  ;;  %v1459_v24 = vpack.c.bf16 %v720_v23, %v719_v22 }
  0x1c   :  { %1186 = vmatmul.mubr.msk.f32.gmra.mrb[4].mxu0 %vm73_vm0, %v31_v33  ;;  %1440 = vmatprep.subr.bf16.mxu0 %v1439_v9 }
  0x1d   :  { %1188 = vmatprep.mubr.msk.f32.mxu0 %vm73_vm0, %v32_v34  ;;  %1210 = vmatmul.mubr.msk.f32.gmra.mrb[4].mxu1 %vm73_vm0, %v47_v35 }
  0x1e   :  { %1212 = vmatprep.mubr.msk.f32.mxu1 %vm73_vm0, %v48_v36  ;;  %1414 = vmatpush3.bf16.msra.mxu1 %v1411_v30 }
  0x1f   :  { %1416 = vmatprep.subr.bf16.mxu1 %v1415_v37  ;;  %1442 = vmatpush3.bf16.msra.mxu0 %v1439_v9 }
  0x20   :  { %1189 = vmatmul.mubr.msk.f32.gmra.mrb[6].mxu0 %vm73_vm0, %v33_v40  ;;  %1444 = vmatprep.subr.bf16.mxu0 %v1443_v12 }
  0x21   :  { %1191 = vmatprep.mubr.msk.f32.mxu0 %vm73_vm0, %v34_v41  ;;  %1213 = vmatmul.mubr.msk.f32.gmra.mrb[6].mxu1 %vm73_vm0, %v49_v42 }
  0x22   :  { %1215 = vmatprep.mubr.msk.f32.mxu1 %vm73_vm0, %v50_v43  ;;  %1418 = vmatpush3.bf16.msra.mxu1 %v1415_v37 }
  0x23   :  { %1420 = vmatprep.subr.bf16.mxu1 %v1419_v44  ;;  %1446 = vmatpush3.bf16.msra.mxu0 %v1443_v12 }
  0x24   :  { %1192 = vmatmul.mubr.msk.f32.gmra.mrb[8].mxu0 %vm73_vm0, %v35_v47  ;;  %1448 = vmatprep.subr.bf16.mxu0 %v1447_v15 }
  0x25   :  { %1194 = vmatprep.mubr.msk.f32.mxu0 %vm73_vm0, %v36_v48  ;;  %1216 = vmatmul.mubr.msk.f32.gmra.mrb[8].mxu1 %vm73_vm0, %v51_v49 }
  0x26   :  { %1218 = vmatprep.mubr.msk.f32.mxu1 %vm73_vm0, %v52_v50  ;;  %1422 = vmatpush3.bf16.msra.mxu1 %v1419_v44 }
  0x27   :  { %1424 = vmatprep.subr.bf16.mxu1 %v1423_v51  ;;  %1450 = vmatpush3.bf16.msra.mxu0 %v1447_v15 }
  0x28   :  { %1195 = vmatmul.mubr.msk.f32.gmra.mrb[10].mxu0 %vm73_vm0, %v37_v54  ;;  %1452 = vmatprep.subr.bf16.mxu0 %v1451_v18 }
  0x29   :  { %1197 = vmatprep.mubr.msk.f32.mxu0 %vm73_vm0, %v38_v55  ;;  %1219 = vmatmul.mubr.msk.f32.gmra.mrb[10].mxu1 %vm73_vm0, %v53_v56 }
  0x2a   :  { %1221 = vmatprep.mubr.msk.f32.mxu1 %vm73_vm0, %v54_v57  ;;  %1426 = vmatpush3.bf16.msra.mxu1 %v1423_v51 }
  0x2b   :  { %1428 = vmatprep.subr.bf16.mxu1 %v1427_v58  ;;  %1454 = vmatpush3.bf16.msra.mxu0 %v1451_v18 }
  0x2c   :  { %1198 = vmatmul.mubr.msk.f32.gmra.mrb[12].mxu0 %vm73_vm0, %v39_v59  ;;  %1456 = vmatprep.subr.bf16.mxu0 %v1455_v21 }
  0x2d   :  { %1200 = vmatprep.mubr.msk.f32.mxu0 %vm73_vm0, %v40_v60  ;;  %1222 = vmatmul.mubr.msk.f32.gmra.mrb[12].mxu1 %vm73_vm0, %v55_v61 }
  0x2e   :  { %1224 = vmatprep.mubr.msk.f32.mxu1 %vm73_vm0, %v56_v62  ;;  %1430 = vmatpush3.bf16.msra.mxu1 %v1427_v58 }
  0x2f   :  { %1432 = vmatprep.subr.bf16.mxu1 %v1431_v3  ;;  %1458 = vmatpush3.bf16.msra.mxu0 %v1455_v21 }
  0x30   :  { %1201 = vmatmul.mubr.msk.f32.gmra.mrb[14].mxu0 %vm73_vm0, %v41_v63  ;;  %1460 = vmatprep.subr.bf16.mxu0 %v1459_v24 }
  0x31   :  { %1225 = vmatmul.mubr.msk.f32.gmra.mrb[14].mxu1 %vm73_vm0, %v57_v0 }
  0x32   :  { %1434 = vmatpush3.bf16.msra.mxu1 %v1431_v3 }
  0x33   :  { %1462 = vmatpush3.bf16.msra.mxu0 %v1459_v24 }
  0xe7   :  { %v1181_v26 = vpop.f32.mrb[0].mxu0 }
  0xe8   :  { %v242_v27 = vadd.f32 %v1181_v26, %v1760_v25  ;;  %v236_v28 = vpop.f32.mrb[1].mxu0  ;;  %v1763_v29 = vpop.f32.mrb[0].mxu1 }
  0xe9   :  { %v237_v30 = vadd.f32 %v1760_v25, %v236_v28  ;;  %v1766_v31 = vpop.f32.mrb[1].mxu1 }
  0xea   :  { %v396_v34 = vmax.f32 %v242_v27, 0.0  ;;  %v317_v18 = vadd.f32 %v1760_v25, %v1766_v31 }
  0xeb   :  { %v395_v32 = vmax.f32 %v237_v30, 0.0  ;;  %v1184_v33 = vpop.f32.mrb[2].mxu0 }
  0xec   :  { %v252_v35 = vadd.f32 %v1184_v33, %v1760_v25  ;;  %v246_v36 = vpop.f32.mrb[3].mxu0  ;;  %v1769_v37 = vpop.f32.mrb[2].mxu1  ;;  %v411_v27 = vmax.f32 %v317_v18, 0.0 }
  0xed   :  { %v247_v38 = vadd.f32 %v1760_v25, %v246_v36  ;;  %1259 = vmatprep.mubr.f32.mxu1 %v395_v32  ;;  %v1772_v39 = vpop.f32.mrb[3].mxu1  ;;  %v322_v32 = vadd.f32 %v1763_v29, %v1760_v25 }
  0xee   :  { %1260 = vmatmul.mubr.f32.vlgmr.msra.gmra.mrb[16].mxu1 %v396_v34  ;;  %v398_v42 = vmax.f32 %v252_v35, 0.0  ;;  %v327_v28 = vadd.f32 %v1760_v25, %v1772_v39  ;;  %v332_v35 = vadd.f32 %v1769_v37, %v1760_v25 }
  0xef   :  { %v397_v40 = vmax.f32 %v247_v38, 0.0  ;;  %v1187_v41 = vpop.f32.mrb[4].mxu0  ;;  %v412_v34 = vmax.f32 %v322_v32, 0.0 }
  0xf0   :  { %v262_v43 = vadd.f32 %v1187_v41, %v1760_v25  ;;  %v256_v44 = vpop.f32.mrb[5].mxu0  ;;  %v1775_v45 = vpop.f32.mrb[4].mxu1  ;;  %v413_v31 = vmax.f32 %v327_v28, 0.0  ;;  %v414_v39 = vmax.f32 %v332_v35, 0.0 }
  0xf1   :  { %v257_v46 = vadd.f32 %v1760_v25, %v256_v44  ;;  %1262 = vmatprep.mubr.f32.mxu1 %v397_v40  ;;  %v336_v47 = vpop.f32.mrb[5].mxu1  ;;  %v342_v40 = vadd.f32 %v1775_v45, %v1760_v25 }
  0xf2   :  { %1263 = vmatmul.mubr.f32.gmra.mrb[18].mxu1 %v398_v42  ;;  %v400_v50 = vmax.f32 %v262_v43, 0.0  ;;  %v337_v33 = vadd.f32 %v1760_v25, %v336_v47 }
  0xf3   :  { %v399_v48 = vmax.f32 %v257_v46, 0.0  ;;  %v1190_v49 = vpop.f32.mrb[6].mxu0  ;;  %v416_v42 = vmax.f32 %v342_v40, 0.0 }
  0xf4   :  { %v272_v51 = vadd.f32 %v1190_v49, %v1760_v25  ;;  %v266_v52 = vpop.f32.mrb[7].mxu0  ;;  %v1779_v53 = vpop.f32.mrb[6].mxu1  ;;  %v415_v36 = vmax.f32 %v337_v33, 0.0 }
  0xf5   :  { %v267_v54 = vadd.f32 %v1760_v25, %v266_v52  ;;  %1265 = vmatprep.mubr.f32.mxu1 %v399_v48  ;;  %v346_v55 = vpop.f32.mrb[7].mxu1  ;;  %v352_v43 = vadd.f32 %v1779_v53, %v1760_v25 }
  0xf6   :  { %1266 = vmatmul.mubr.f32.gmra.mrb[20].mxu1 %v400_v50  ;;  %v402_v58 = vmax.f32 %v272_v51, 0.0  ;;  %v347_v38 = vadd.f32 %v1760_v25, %v346_v55 }
  0xf7   :  { %v401_v56 = vmax.f32 %v267_v54, 0.0  ;;  %v1193_v57 = vpop.f32.mrb[8].mxu0  ;;  %v418_v46 = vmax.f32 %v352_v43, 0.0 }
  0xf8   :  { %v282_v59 = vadd.f32 %v1193_v57, %v1760_v25  ;;  %v276_v60 = vpop.f32.mrb[9].mxu0  ;;  %v1783_v61 = vpop.f32.mrb[8].mxu1  ;;  %v417_v29 = vmax.f32 %v347_v38, 0.0 }
  0xf9   :  { %v277_v62 = vadd.f32 %v1760_v25, %v276_v60  ;;  %1268 = vmatprep.mubr.f32.mxu1 %v401_v56  ;;  %v356_v63 = vpop.f32.mrb[9].mxu1  ;;  %v362_v47 = vadd.f32 %v1783_v61, %v1760_v25  ;;  %v722_v60 = vld [vmem:[%s2026_s5 + $0x78] sm:$0xff] }
  0xfa   :  { %1269 = vmatmul.mubr.f32.gmra.mrb[22].mxu1 %v402_v58  ;;  %v404_v2 = vmax.f32 %v282_v59, 0.0  ;;  %v357_v41 = vadd.f32 %v1760_v25, %v356_v63  ;;  %v721_v59 = vld [vmem:[%s2026_s5 + $0x70] sm:$0xff] }
  0xfb   :  { %v403_v0 = vmax.f32 %v277_v62, 0.0  ;;  %v1196_v1 = vpop.f32.mrb[10].mxu0  ;;  %v420_v49 = vmax.f32 %v362_v47, 0.0  ;;  %v1463_v61 = vpack.c.bf16 %v722_v60, %v721_v59  ;;  %v1824_v62 = vld [vmem:[%s2028_s4] ss:$0 sm:$0xff] }
  0xfc   :  { %v292_v3 = vadd.f32 %v1196_v1, %v1760_v25  ;;  %v286_v4 = vpop.f32.mrb[11].mxu0  ;;  %v1220_v5 = vpop.f32.mrb[10].mxu1  ;;  %v419_v37 = vmax.f32 %v357_v41, 0.0 }
  0xfd   :  { %v287_v6 = vadd.f32 %v1760_v25, %v286_v4  ;;  %1271 = vmatprep.mubr.f32.mxu1 %v403_v0  ;;  %v366_v7 = vpop.f32.mrb[11].mxu1  ;;  %v372_v50 = vadd.f32 %v1220_v5, %v1760_v25  ;;  %1464 = vmatprep.subr.bf16.mxu0 %v1463_v61 }
  0xfe   :  { %1272 = vmatmul.mubr.f32.gmra.mrb[24].mxu1 %v404_v2  ;;  %v406_v10 = vmax.f32 %v292_v3, 0.0  ;;  %v367_v44 = vadd.f32 %v1760_v25, %v366_v7  ;;  %1466 = vmatpush3.bf16.msra.mxu0 %v1463_v61 }
  0xff   :  { %v405_v8 = vmax.f32 %v287_v6, 0.0  ;;  %v1199_v9 = vpop.f32.mrb[12].mxu0  ;;  %v422_v53 = vmax.f32 %v372_v50, 0.0 }
 0x100   :  { %v302_v11 = vadd.f32 %v1199_v9, %v1760_v25  ;;  %v296_v12 = vpop.f32.mrb[13].mxu0  ;;  %v1223_v13 = vpop.f32.mrb[12].mxu1  ;;  %v421_v45 = vmax.f32 %v367_v44, 0.0 }
 0x101   :  { %v297_v14 = vadd.f32 %v1760_v25, %v296_v12  ;;  %1274 = vmatprep.mubr.f32.mxu1 %v405_v8  ;;  %v376_v15 = vpop.f32.mrb[13].mxu1  ;;  %v382_v54 = vadd.f32 %v1223_v13, %v1760_v25 }
 0x102   :  { %1275 = vmatmul.mubr.f32.gmra.mrb[26].mxu1 %v406_v10  ;;  %v408_v19 = vmax.f32 %v302_v11, 0.0  ;;  %v377_v48 = vadd.f32 %v1760_v25, %v376_v15 }
 0x103   :  { %v407_v16 = vmax.f32 %v297_v14, 0.0  ;;  %v1202_v17 = vpop.f32.mrb[14].mxu0  ;;  %v424_v56 = vmax.f32 %v382_v54, 0.0 }
 0x104   :  { %v312_v20 = vadd.f32 %v1202_v17, %v1760_v25  ;;  %v306_v21 = vpop.f32.mrb[15].mxu0  ;;  %v1226_v22 = vpop.f32.mrb[14].mxu1  ;;  %v423_v51 = vmax.f32 %v377_v48, 0.0 }
 0x105   :  { %v307_v23 = vadd.f32 %v1760_v25, %v306_v21  ;;  %1277 = vmatprep.mubr.f32.mxu1 %v407_v16  ;;  %v386_v24 = vpop.f32.mrb[15].mxu1  ;;  %v392_v57 = vadd.f32 %v1226_v22, %v1760_v25 }
 0x106   :  { %1278 = vmatmul.mubr.f32.gmra.mrb[28].mxu1 %v408_v19  ;;  %v410_v30 = vmax.f32 %v312_v20, 0.0  ;;  %v387_v52 = vadd.f32 %v1760_v25, %v386_v24 }
 0x107   :  { %v409_v26 = vmax.f32 %v307_v23, 0.0  ;;  %v426_v58 = vmax.f32 %v392_v57, 0.0 }
 0x108   :  { %v425_v55 = vmax.f32 %v387_v52, 0.0 }
 0x109   :  { %1280 = vmatprep.mubr.f32.mxu1 %v409_v26 }
 0x10a   :  { %1281 = vmatmul.mubr.f32.gmra.mrb[30].mxu1 %v410_v30 }
 0x10b   :  { %1283 = vmatprep.mubr.f32.mxu1 %v411_v27 }
 0x10e   :  { %1284 = vmatmul.mubr.f32.gmra.mrb[32].mxu1 %v412_v34 }
 0x10f   :  { %1286 = vmatprep.mubr.f32.mxu1 %v413_v31 }
 0x112   :  { %1287 = vmatmul.mubr.f32.gmra.mrb[34].mxu1 %v414_v39 }
 0x113   :  { %1289 = vmatprep.mubr.f32.mxu1 %v415_v36 }
 0x116   :  { %1290 = vmatmul.mubr.f32.gmra.mrb[36].mxu1 %v416_v42 }
 0x117   :  { %1292 = vmatprep.mubr.f32.mxu1 %v417_v29 }
 0x11a   :  { %1293 = vmatmul.mubr.f32.gmra.mrb[38].mxu1 %v418_v46 }
 0x11b   :  { %1295 = vmatprep.mubr.f32.mxu1 %v419_v37 }
 0x11e   :  { %1296 = vmatmul.mubr.f32.gmra.mrb[40].mxu1 %v420_v49 }
 0x11f   :  { %1298 = vmatprep.mubr.f32.mxu1 %v421_v45 }
 0x122   :  { %1299 = vmatmul.mubr.f32.gmra.mrb[42].mxu1 %v422_v53 }
 0x123   :  { %1301 = vmatprep.mubr.f32.mxu1 %v423_v51 }
 0x126   :  { %1302 = vmatmul.mubr.f32.gmra.mrb[44].mxu1 %v424_v56 }
 0x127   :  { %1304 = vmatprep.mubr.f32.mxu1 %v425_v55 }
 0x12a   :  { %1305 = vmatmul.mubr.f32.gmra.mrb[46].mxu1 %v426_v58 }
 0x1c1   :  { %v1261_v25 = vpop.f32.mrb[16].mxu1 }
 0x1c2   :  { %v522_v63 = vadd.f32 %v1261_v25, %v1824_v62  ;;  %v516_v0 = vpop.f32.mrb[17].mxu1 }
 0x1c3   :  { %v517_v1 = vadd.f32 %v1824_v62, %v516_v0 }
 0x1c4   :  { %v676_v4 = vmax.f32 %v522_v63, 0.0 }
 0x1c5   :  { %v675_v2 = vmax.f32 %v517_v1, 0.0  ;;  %v1264_v3 = vpop.f32.mrb[18].mxu1 }
 0x1c6   :  { %v532_v5 = vadd.f32 %v1264_v3, %v1824_v62  ;;  %v526_v6 = vpop.f32.mrb[19].mxu1 }
 0x1c7   :  { %v527_v7 = vadd.f32 %v1824_v62, %v526_v6  ;;  %1339 = vmatprep.mubr.f32.mxu0 %v675_v2 }
 0x1c8   :  { %1340 = vmatmul.mubr.f32.vlgmr.msra.gmra.mrb[16].mxu0 %v676_v4  ;;  %v678_v10 = vmax.f32 %v532_v5, 0.0 }
 0x1c9   :  { %v677_v8 = vmax.f32 %v527_v7, 0.0  ;;  %v1267_v9 = vpop.f32.mrb[20].mxu1 }
 0x1ca   :  { %v542_v11 = vadd.f32 %v1267_v9, %v1824_v62  ;;  %v536_v12 = vpop.f32.mrb[21].mxu1 }
 0x1cb   :  { %v537_v13 = vadd.f32 %v1824_v62, %v536_v12  ;;  %1342 = vmatprep.mubr.f32.mxu0 %v677_v8 }
 0x1cc   :  { %1343 = vmatmul.mubr.f32.gmra.mrb[18].mxu0 %v678_v10  ;;  %v680_v16 = vmax.f32 %v542_v11, 0.0 }
 0x1cd   :  { %v679_v14 = vmax.f32 %v537_v13, 0.0  ;;  %v1270_v15 = vpop.f32.mrb[22].mxu1 }
 0x1ce   :  { %v552_v17 = vadd.f32 %v1270_v15, %v1824_v62  ;;  %v546_v18 = vpop.f32.mrb[23].mxu1 }
 0x1cf   :  { %v547_v19 = vadd.f32 %v1824_v62, %v546_v18  ;;  %1345 = vmatprep.mubr.f32.mxu0 %v679_v14 }
 0x1d0   :  { %1346 = vmatmul.mubr.f32.gmra.mrb[20].mxu0 %v680_v16  ;;  %v682_v22 = vmax.f32 %v552_v17, 0.0 }
 0x1d1   :  { %v681_v20 = vmax.f32 %v547_v19, 0.0  ;;  %v1273_v21 = vpop.f32.mrb[24].mxu1 }
 0x1d2   :  { %v562_v23 = vadd.f32 %v1273_v21, %v1824_v62  ;;  %v556_v24 = vpop.f32.mrb[25].mxu1 }
 0x1d3   :  { %v557_v26 = vadd.f32 %v1824_v62, %v556_v24  ;;  %1348 = vmatprep.mubr.f32.mxu0 %v681_v20 }
 0x1d4   :  { %1349 = vmatmul.mubr.f32.gmra.mrb[22].mxu0 %v682_v22  ;;  %v684_v30 = vmax.f32 %v562_v23, 0.0 }
 0x1d5   :  { %v683_v27 = vmax.f32 %v557_v26, 0.0  ;;  %v1276_v28 = vpop.f32.mrb[26].mxu1 }
 0x1d6   :  { %v572_v32 = vadd.f32 %v1276_v28, %v1824_v62  ;;  %v566_v31 = vpop.f32.mrb[27].mxu1 }
 0x1d7   :  { %v567_v33 = vadd.f32 %v1824_v62, %v566_v31  ;;  %1351 = vmatprep.mubr.f32.mxu0 %v683_v27 }
 0x1d8   :  { %1352 = vmatmul.mubr.f32.gmra.mrb[24].mxu0 %v684_v30  ;;  %v686_v36 = vmax.f32 %v572_v32, 0.0 }
 0x1d9   :  { %v685_v34 = vmax.f32 %v567_v33, 0.0  ;;  %v1279_v35 = vpop.f32.mrb[28].mxu1  ;;  %v1861_v33 = vld [vmem:[%s2029_s6] ss:$0 sm:$0xff] }
 0x1da   :  { %v582_v38 = vadd.f32 %v1279_v35, %v1824_v62  ;;  %v576_v39 = vpop.f32.mrb[29].mxu1 }
 0x1db   :  { %v577_v40 = vadd.f32 %v1824_v62, %v576_v39  ;;  %1354 = vmatprep.mubr.f32.mxu0 %v685_v34 }
 0x1dc   :  { %1355 = vmatmul.mubr.f32.gmra.mrb[26].mxu0 %v686_v36  ;;  %v688_v42 = vmax.f32 %v582_v38, 0.0 }
 0x1dd   :  { %v687_v29 = vmax.f32 %v577_v40, 0.0  ;;  %v1282_v41 = vpop.f32.mrb[30].mxu1 }
 0x1de   :  { %v592_v43 = vadd.f32 %v1282_v41, %v1824_v62  ;;  %v586_v37 = vpop.f32.mrb[31].mxu1 }
 0x1df   :  { %v587_v44 = vadd.f32 %v1824_v62, %v586_v37  ;;  %1357 = vmatprep.mubr.f32.mxu0 %v687_v29 }
 0x1e0   :  { %1358 = vmatmul.mubr.f32.gmra.mrb[28].mxu0 %v688_v42  ;;  %v690_v45 = vmax.f32 %v592_v43, 0.0 }
 0x1e1   :  { %v689_v46 = vmax.f32 %v587_v44, 0.0  ;;  %v1285_v47 = vpop.f32.mrb[32].mxu1 }
 0x1e2   :  { %v602_v48 = vadd.f32 %v1285_v47, %v1824_v62  ;;  %v596_v49 = vpop.f32.mrb[33].mxu1 }
 0x1e3   :  { %v597_v50 = vadd.f32 %v1824_v62, %v596_v49  ;;  %1360 = vmatprep.mubr.f32.mxu0 %v689_v46 }
 0x1e4   :  { %1361 = vmatmul.mubr.f32.gmra.mrb[30].mxu0 %v690_v45  ;;  %v692_v53 = vmax.f32 %v602_v48, 0.0 }
 0x1e5   :  { %v691_v51 = vmax.f32 %v597_v50, 0.0  ;;  %v1288_v52 = vpop.f32.mrb[34].mxu1 }
 0x1e6   :  { %v612_v54 = vadd.f32 %v1288_v52, %v1824_v62  ;;  %v606_v55 = vpop.f32.mrb[35].mxu1 }
 0x1e7   :  { %v607_v56 = vadd.f32 %v1824_v62, %v606_v55  ;;  %1363 = vmatprep.mubr.f32.mxu0 %v691_v51 }
 0x1e8   :  { %1364 = vmatmul.mubr.f32.gmra.mrb[32].mxu0 %v692_v53  ;;  %v694_v59 = vmax.f32 %v612_v54, 0.0 }
 0x1e9   :  { %v693_v57 = vmax.f32 %v607_v56, 0.0  ;;  %v1291_v58 = vpop.f32.mrb[36].mxu1 }
 0x1ea   :  { %v622_v60 = vadd.f32 %v1291_v58, %v1824_v62  ;;  %v616_v61 = vpop.f32.mrb[37].mxu1 }
 0x1eb   :  { %v617_v25 = vadd.f32 %v1824_v62, %v616_v61  ;;  %1366 = vmatprep.mubr.f32.mxu0 %v693_v57 }
 0x1ec   :  { %1367 = vmatmul.mubr.f32.gmra.mrb[34].mxu0 %v694_v59  ;;  %v696_v1 = vmax.f32 %v622_v60, 0.0 }
 0x1ed   :  { %v695_v63 = vmax.f32 %v617_v25, 0.0  ;;  %v1294_v0 = vpop.f32.mrb[38].mxu1 }
 0x1ee   :  { %v632_v2 = vadd.f32 %v1294_v0, %v1824_v62  ;;  %v626_v3 = vpop.f32.mrb[39].mxu1 }
 0x1ef   :  { %v627_v4 = vadd.f32 %v1824_v62, %v626_v3  ;;  %1369 = vmatprep.mubr.f32.mxu0 %v695_v63 }
 0x1f0   :  { %1370 = vmatmul.mubr.f32.gmra.mrb[36].mxu0 %v696_v1  ;;  %v698_v7 = vmax.f32 %v632_v2, 0.0 }
 0x1f1   :  { %v697_v5 = vmax.f32 %v627_v4, 0.0  ;;  %v1297_v6 = vpop.f32.mrb[40].mxu1 }
 0x1f2   :  { %v642_v8 = vadd.f32 %v1297_v6, %v1824_v62  ;;  %v636_v9 = vpop.f32.mrb[41].mxu1 }
 0x1f3   :  { %v637_v10 = vadd.f32 %v1824_v62, %v636_v9  ;;  %1372 = vmatprep.mubr.f32.mxu0 %v697_v5 }
 0x1f4   :  { %1373 = vmatmul.mubr.f32.gmra.mrb[38].mxu0 %v698_v7  ;;  %v700_v13 = vmax.f32 %v642_v8, 0.0 }
 0x1f5   :  { %v699_v11 = vmax.f32 %v637_v10, 0.0  ;;  %v1300_v12 = vpop.f32.mrb[42].mxu1 }
 0x1f6   :  { %v652_v14 = vadd.f32 %v1300_v12, %v1824_v62  ;;  %v646_v15 = vpop.f32.mrb[43].mxu1 }
 0x1f7   :  { %v647_v16 = vadd.f32 %v1824_v62, %v646_v15  ;;  %1375 = vmatprep.mubr.f32.mxu0 %v699_v11 }
 0x1f8   :  { %1376 = vmatmul.mubr.f32.gmra.mrb[40].mxu0 %v700_v13  ;;  %v702_v19 = vmax.f32 %v652_v14, 0.0 }
 0x1f9   :  { %v701_v17 = vmax.f32 %v647_v16, 0.0  ;;  %v1303_v18 = vpop.f32.mrb[44].mxu1 }
 0x1fa   :  { %v662_v20 = vadd.f32 %v1303_v18, %v1824_v62  ;;  %v656_v21 = vpop.f32.mrb[45].mxu1 }
 0x1fb   :  { %v657_v22 = vadd.f32 %v1824_v62, %v656_v21  ;;  %1378 = vmatprep.mubr.f32.mxu0 %v701_v17 }
 0x1fc   :  { %1379 = vmatmul.mubr.f32.gmra.mrb[42].mxu0 %v702_v19  ;;  %v704_v26 = vmax.f32 %v662_v20, 0.0 }
 0x1fd   :  { %v703_v23 = vmax.f32 %v657_v22, 0.0  ;;  %v1306_v24 = vpop.f32.mrb[46].mxu1 }
 0x1fe   :  { %v672_v27 = vadd.f32 %v1306_v24, %v1824_v62  ;;  %v666_v28 = vpop.f32.mrb[47].mxu1 }
 0x1ff   :  { %v667_v30 = vadd.f32 %v1824_v62, %v666_v28  ;;  %1381 = vmatprep.mubr.f32.mxu0 %v703_v23 }
 0x200   :  { %1382 = vmatmul.mubr.f32.gmra.mrb[44].mxu0 %v704_v26  ;;  %v706_v31 = vmax.f32 %v672_v27, 0.0 }
 0x201   :  { %v705_v32 = vmax.f32 %v667_v30, 0.0 }
 0x203   :  { %1384 = vmatprep.mubr.f32.mxu0 %v705_v32 }
 0x204   :  { %1385 = vmatmul.mubr.f32.gmra.mrb[46].mxu0 %v706_v31 }
 0x29b   :  { %v1341_v34 = vpop.f32.mrb[16].mxu0 }
 0x29c   :  { %v802_v35 = vadd.f32 %v1341_v34, %v1861_v33  ;;  %v796_v36 = vpop.f32.mrb[17].mxu0 }
 0x29d   :  { %v797_v38 = vadd.f32 %v1861_v33, %v796_v36 }
 0x29e   :  { %957 = vst.msk [vmem:[%s2030_s7 + $0x8] sm:$0xff] %vm955_vm1, %v802_v35 }
 0x29f   :  { %956 = vst.msk [vmem:[%s2030_s7] sm:$0xff] %vm955_vm1, %v797_v38  ;;  %v1344_v62 = vpop.f32.mrb[18].mxu0 }
 0x2a0   :  { %v812_v39 = vadd.f32 %v1344_v62, %v1861_v33  ;;  %v806_v40 = vpop.f32.mrb[19].mxu0 }
 0x2a1   :  { %v807_v29 = vadd.f32 %v1861_v33, %v806_v40 }
 0x2a2   :  { %959 = vst.msk [vmem:[%s2030_s7 + $0x18] sm:$0xff] %vm955_vm1, %v812_v39 }
 0x2a3   :  { %958 = vst.msk [vmem:[%s2030_s7 + $0x10] sm:$0xff] %vm955_vm1, %v807_v29  ;;  %v1347_v41 = vpop.f32.mrb[20].mxu0 }
 0x2a4   :  { %v822_v42 = vadd.f32 %v1347_v41, %v1861_v33  ;;  %v816_v43 = vpop.f32.mrb[21].mxu0 }
 0x2a5   :  { %v817_v37 = vadd.f32 %v1861_v33, %v816_v43 }
 0x2a6   :  { %961 = vst.msk [vmem:[%s2030_s7 + $0x28] sm:$0xff] %vm955_vm1, %v822_v42 }
 0x2a7   :  { %960 = vst.msk [vmem:[%s2030_s7 + $0x20] sm:$0xff] %vm955_vm1, %v817_v37  ;;  %v1350_v44 = vpop.f32.mrb[22].mxu0 }
 0x2a8   :  { %v832_v46 = vadd.f32 %v1350_v44, %v1861_v33  ;;  %v826_v47 = vpop.f32.mrb[23].mxu0 }
 0x2a9   :  { %v827_v45 = vadd.f32 %v1861_v33, %v826_v47 }
 0x2aa   :  { %963 = vst.msk [vmem:[%s2030_s7 + $0x38] sm:$0xff] %vm955_vm1, %v832_v46 }
 0x2ab   :  { %962 = vst.msk [vmem:[%s2030_s7 + $0x30] sm:$0xff] %vm955_vm1, %v827_v45  ;;  %v1353_v48 = vpop.f32.mrb[24].mxu0 }
 0x2ac   :  { %v842_v49 = vadd.f32 %v1353_v48, %v1861_v33  ;;  %v836_v50 = vpop.f32.mrb[25].mxu0 }
 0x2ad   :  { %v837_v51 = vadd.f32 %v1861_v33, %v836_v50 }
 0x2ae   :  { %965 = vst.msk [vmem:[%s2030_s7 + $0x48] sm:$0xff] %vm955_vm1, %v842_v49 }
 0x2af   :  { %964 = vst.msk [vmem:[%s2030_s7 + $0x40] sm:$0xff] %vm955_vm1, %v837_v51  ;;  %v1356_v52 = vpop.f32.mrb[26].mxu0 }
 0x2b0   :  { %v852_v53 = vadd.f32 %v1356_v52, %v1861_v33  ;;  %v846_v54 = vpop.f32.mrb[27].mxu0 }
 0x2b1   :  { %v847_v55 = vadd.f32 %v1861_v33, %v846_v54 }
 0x2b2   :  { %967 = vst.msk [vmem:[%s2030_s7 + $0x58] sm:$0xff] %vm955_vm1, %v852_v53 }
 0x2b3   :  { %966 = vst.msk [vmem:[%s2030_s7 + $0x50] sm:$0xff] %vm955_vm1, %v847_v55  ;;  %v1359_v56 = vpop.f32.mrb[28].mxu0 }
 0x2b4   :  { %v862_v57 = vadd.f32 %v1359_v56, %v1861_v33  ;;  %v856_v58 = vpop.f32.mrb[29].mxu0 }
 0x2b5   :  { %v857_v59 = vadd.f32 %v1861_v33, %v856_v58 }
 0x2b6   :  { %969 = vst.msk [vmem:[%s2030_s7 + $0x68] sm:$0xff] %vm955_vm1, %v862_v57 }
 0x2b7   :  { %968 = vst.msk [vmem:[%s2030_s7 + $0x60] sm:$0xff] %vm955_vm1, %v857_v59  ;;  %v1362_v60 = vpop.f32.mrb[30].mxu0 }
 0x2b8   :  { %v872_v61 = vadd.f32 %v1362_v60, %v1861_v33  ;;  %v866_v25 = vpop.f32.mrb[31].mxu0 }
 0x2b9   :  { %v867_v63 = vadd.f32 %v1861_v33, %v866_v25 }
 0x2ba   :  { %971 = vst.msk [vmem:[%s2030_s7 + $0x78] sm:$0xff] %vm955_vm1, %v872_v61 }
 0x2bb   :  { %970 = vst.msk [vmem:[%s2030_s7 + $0x70] sm:$0xff] %vm955_vm1, %v867_v63  ;;  %v1365_v0 = vpop.f32.mrb[32].mxu0 }
 0x2bc   :  { %v882_v1 = vadd.f32 %v1365_v0, %v1861_v33  ;;  %v876_v2 = vpop.f32.mrb[33].mxu0 }
 0x2bd   :  { %v877_v3 = vadd.f32 %v1861_v33, %v876_v2 }
 0x2be   :  { %973 = vst.msk [vmem:[%s2030_s7 + $0x88] sm:$0xff] %vm955_vm1, %v882_v1 }
 0x2bf   :  { %972 = vst.msk [vmem:[%s2030_s7 + $0x80] sm:$0xff] %vm955_vm1, %v877_v3  ;;  %v1368_v4 = vpop.f32.mrb[34].mxu0 }
 0x2c0   :  { %v892_v5 = vadd.f32 %v1368_v4, %v1861_v33  ;;  %v886_v6 = vpop.f32.mrb[35].mxu0 }
 0x2c1   :  { %v887_v7 = vadd.f32 %v1861_v33, %v886_v6 }
 0x2c2   :  { %975 = vst.msk [vmem:[%s2030_s7 + $0x98] sm:$0xff] %vm955_vm1, %v892_v5 }
 0x2c3   :  { %974 = vst.msk [vmem:[%s2030_s7 + $0x90] sm:$0xff] %vm955_vm1, %v887_v7  ;;  %v1371_v8 = vpop.f32.mrb[36].mxu0 }
 0x2c4   :  { %v902_v9 = vadd.f32 %v1371_v8, %v1861_v33  ;;  %v896_v10 = vpop.f32.mrb[37].mxu0 }
 0x2c5   :  { %v897_v11 = vadd.f32 %v1861_v33, %v896_v10 }
 0x2c6   :  { %977 = vst.msk [vmem:[%s2030_s7 + $0xa8] sm:$0xff] %vm955_vm1, %v902_v9 }
 0x2c7   :  { %976 = vst.msk [vmem:[%s2030_s7 + $0xa0] sm:$0xff] %vm955_vm1, %v897_v11  ;;  %v1374_v12 = vpop.f32.mrb[38].mxu0 }
 0x2c8   :  { %v912_v13 = vadd.f32 %v1374_v12, %v1861_v33  ;;  %v906_v14 = vpop.f32.mrb[39].mxu0 }
 0x2c9   :  { %v907_v15 = vadd.f32 %v1861_v33, %v906_v14 }
 0x2ca   :  { %979 = vst.msk [vmem:[%s2030_s7 + $0xb8] sm:$0xff] %vm955_vm1, %v912_v13 }
 0x2cb   :  { %978 = vst.msk [vmem:[%s2030_s7 + $0xb0] sm:$0xff] %vm955_vm1, %v907_v15  ;;  %v1377_v16 = vpop.f32.mrb[40].mxu0 }
 0x2cc   :  { %v922_v17 = vadd.f32 %v1377_v16, %v1861_v33  ;;  %v916_v18 = vpop.f32.mrb[41].mxu0 }
 0x2cd   :  { %v917_v19 = vadd.f32 %v1861_v33, %v916_v18 }
 0x2ce   :  { %981 = vst.msk [vmem:[%s2030_s7 + $0xc8] sm:$0xff] %vm955_vm1, %v922_v17 }
 0x2cf   :  { %980 = vst.msk [vmem:[%s2030_s7 + $0xc0] sm:$0xff] %vm955_vm1, %v917_v19  ;;  %v1380_v20 = vpop.f32.mrb[42].mxu0 }
 0x2d0   :  { %v932_v21 = vadd.f32 %v1380_v20, %v1861_v33  ;;  %v926_v22 = vpop.f32.mrb[43].mxu0 }
 0x2d1   :  { %v927_v23 = vadd.f32 %v1861_v33, %v926_v22 }
 0x2d2   :  { %983 = vst.msk [vmem:[%s2030_s7 + $0xd8] sm:$0xff] %vm955_vm1, %v932_v21 }
 0x2d3   :  { %982 = vst.msk [vmem:[%s2030_s7 + $0xd0] sm:$0xff] %vm955_vm1, %v927_v23  ;;  %v1383_v24 = vpop.f32.mrb[44].mxu0 }
 0x2d4   :  { %v942_v26 = vadd.f32 %v1383_v24, %v1861_v33  ;;  %v936_v27 = vpop.f32.mrb[45].mxu0 }
 0x2d5   :  { %v937_v28 = vadd.f32 %v1861_v33, %v936_v27 }
 0x2d6   :  { %985 = vst.msk [vmem:[%s2030_s7 + $0xe8] sm:$0xff] %vm955_vm1, %v942_v26 }
 0x2d7   :  { %984 = vst.msk [vmem:[%s2030_s7 + $0xe0] sm:$0xff] %vm955_vm1, %v937_v28  ;;  %v1386_v30 = vpop.f32.mrb[46].mxu0 }
 0x2d8   :  { %v952_v32 = vadd.f32 %v1386_v30, %v1861_v33  ;;  %v946_v31 = vpop.f32.mrb[47].mxu0 }
 0x2d9   :  { %v947_v34 = vadd.f32 %v1861_v33, %v946_v31 }
 0x2da   :  { %987 = vst.msk [vmem:[%s2030_s7 + $0xf8] sm:$0xff] %vm955_vm1, %v952_v32 }
 0x2db   :  { %986 = vst.msk [vmem:[%s2030_s7 + $0xf0] sm:$0xff] %vm955_vm1, %v947_v34 }

</bundles_post_ra>
